<compile_context>
chip_gen: v6e
topology: v6e:2x2x1
jax: 0.10.0
libtpu: 0.0.40
codegen_flags: <defaults>
</compile_context>

<pallas_src>
import functools

import jax
import jax.numpy as jnp
from jax.experimental import pallas as pl
from jax.experimental.pallas import tpu as pltpu


# ---------------------------------------------------------------------------
# Padded-tile VMEM accounting & generation-aware budgets
# ---------------------------------------------------------------------------
def _round_up(x, m):
    return (x + m - 1) // m * m


# Sublane tile height per element size (f32: 8, bf16/f16: 16, int8/fp8: 32).
_SUBLANE_FOR_ITEMSIZE = {4: 8, 2: 16, 1: 32}


def _padded_block_bytes(block_shape, dtype):
    """VMEM footprint of one block in (sublane, lane)-tiled layout."""
    dtype = jnp.dtype(dtype)
    sub = _SUBLANE_FOR_ITEMSIZE.get(dtype.itemsize, 8)
    shape = tuple(int(d) for d in block_shape)
    if len(shape) == 0:
        return dtype.itemsize
    if len(shape) == 1:
        return _round_up(shape[0], 128) * dtype.itemsize
    lead = 1
    for d in shape[:-2]:
        lead *= d
    return (lead * _round_up(shape[-2], sub) * _round_up(shape[-1], 128)
            * dtype.itemsize)


def _tpu_memory_config():
    """(vmem_limit_cap, per-step block budget, per-step x-traffic target)."""
    vmem_cap = 64 << 20            # conservative default == v7x per-TC VMEM
    try:
        cap = getattr(pltpu.get_tpu_info(), "vmem_capacity_bytes", None)
        if cap:
            vmem_cap = int(cap)
    except Exception:
        pass
    # Scoped-VMEM ceiling: leave ~24 MiB headroom for Mosaic internal scratch,
    # double-buffered params, semaphores.  ~40 MiB on v7x, ~100 MiB on v5e/v6e.
    limit_cap = max(16 << 20, min(vmem_cap - (24 << 20), 100 << 20))
    block_budget = max(8 << 20, limit_cap - (4 << 20))
    # Per-step x-traffic target: v7x's ~3.2 TB/s HBM needs ~4 MiB blocks to
    # amortize the ~0.35us per-step overhead; 2 MiB already hits ~85% of
    # roofline on v5e/v6e.
    block_bytes_target = (4 << 20) if vmem_cap <= (80 << 20) else (2 << 20)
    return limit_cap, block_budget, block_bytes_target


# ---------------------------------------------------------------------------
# Shared gate math: pooled (Nb, C) f32  ->  sigmoid gate (Nb, C) f32
# (strictly row-wise: no mixing between batch rows)
# ---------------------------------------------------------------------------
def _se_gate(pooled, w1_ref, b1_ref, w2_ref, b2_ref, use_mxu):
    w1 = w1_ref[...].astype(jnp.float32)   # (SE, C)
    b1 = b1_ref[...].astype(jnp.float32)   # (1, SE)
    w2 = w2_ref[...].astype(jnp.float32)   # (C, SE)
    b2 = b2_ref[...].astype(jnp.float32)   # (1, C)

    if use_mxu:
        # Large C/SE: a couple of MXU pushes on an otherwise idle unit.
        s = jax.lax.dot_general(pooled, w1, (((1,), (1,)), ((), ())),
                                preferred_element_type=jnp.float32) + b1
    else:
        # Tiny C/SE: broadcast-mul + lane reduce on the VPU.
        s = jnp.sum(pooled[:, None, :] * w1[None, :, :], axis=-1) + b1
    s = s * jax.nn.sigmoid(s)              # Swish

    if use_mxu:
        e = jax.lax.dot_general(s, w2, (((1,), (1,)), ((), ())),
                                preferred_element_type=jnp.float32) + b2
    else:
        e = jnp.sum(s[:, None, :] * w2[None, :, :], axis=-1) + b2
    return jax.nn.sigmoid(e)               # (Nb, C)


# ---------------------------------------------------------------------------
# Fused single-pass kernel: x block is (Nb, C, HW) (NCHW) or (Nb, HW, C) (NHWC)
# ---------------------------------------------------------------------------
def _se_fused_kernel(x_ref, w1_ref, b1_ref, w2_ref, b2_ref, o_ref, *,
                     channels_last, use_mxu):
    spatial_axis = 1 if channels_last else 2
    inv_hw = 1.0 / x_ref.shape[spatial_axis]
    # f32-accumulated pooling; the streamed block stays in the I/O dtype.
    pooled = jnp.sum(x_ref[...], axis=spatial_axis, dtype=jnp.float32) * inv_hw
    # NOTE: when N % Nb != 0 the padded tail rows of the last batch block hold
    # undefined data.  The gate math is strictly row-wise and OOB stores are
    # dropped, so valid rows are unaffected — keep it row-wise.
    gate = _se_gate(pooled, w1_ref, b1_ref, w2_ref, b2_ref, use_mxu)  # (Nb,C) f32
    # Multiply in f32, cast on the store: free on an HBM-bound kernel (v5e has
    # no bf16 VALU anyway) and tightens bf16 accuracy.
    xf = x_ref[...].astype(jnp.float32)
    y = xf * (gate[:, None, :] if channels_last else gate[:, :, None])
    o_ref[...] = y.astype(o_ref.dtype)


# ---------------------------------------------------------------------------
# Chunked fallback, pass 1a: fully parallel per-chunk partial sums.
# Each (batch, chunk) grid step writes its own (1,1,1,C) output block, so both
# grid axes can be "parallel" (both v7x TensorCores stream even at N == 1).
# ---------------------------------------------------------------------------
def _se_partial_sum_kernel(x_ref, psum_ref, *, channels_last, hw_rem):
    spatial_axis = 1 if channels_last else 2

    def write_sum(masked):
        x = x_ref[...]
        if masked:
            # Zero the undefined padded tail of the last (partial) chunk only.
            idx = jax.lax.broadcasted_iota(jnp.int32, x.shape, spatial_axis)
            x = jnp.where(idx < hw_rem, x.astype(jnp.float32), 0.0)
        s = jnp.sum(x, axis=spatial_axis, dtype=jnp.float32)   # (1, C)
        psum_ref[...] = s[:, None, None, :]                    # (1, 1, 1, C)

    if hw_rem == 0:
        write_sum(False)        # every chunk is full: no mask filler at all
    else:
        is_last = pl.program_id(1) == pl.num_programs(1) - 1

        @pl.when(is_last)
        def _():
            write_sum(True)

        @pl.when(jnp.logical_not(is_last))
        def _():
            write_sum(False)


# ---------------------------------------------------------------------------
# Chunked fallback, pass 1b: tiny gate step over the pooled sums.
# ---------------------------------------------------------------------------
def _se_gate_kernel(psum_ref, w1_ref, b1_ref, w2_ref, b2_ref, gate_ref, *,
                    use_mxu, inv_hw):
    t = jnp.sum(psum_ref[...], axis=1)            # (N, 1, C) f32
    pooled = jnp.sum(t, axis=1) * inv_hw          # (N, C)
    gate = _se_gate(pooled, w1_ref, b1_ref, w2_ref, b2_ref, use_mxu)
    gate_ref[...] = gate[:, None, :]              # (N, 1, C) lane-dense


# ---------------------------------------------------------------------------
# Chunked fallback, pass 2: elementwise scale (fully parallel grid).
# ---------------------------------------------------------------------------
def _se_scale_kernel(x_ref, gate_ref, o_ref, *, channels_last):
    g = gate_ref[...][:, 0, :]                    # (1, C) f32
    xf = x_ref[...].astype(jnp.float32)
    y = xf * (g[:, None, :] if channels_last else g[:, :, None])
    o_ref[...] = y.astype(o_ref.dtype)


# ---------------------------------------------------------------------------
# Wrapper
# ---------------------------------------------------------------------------
def squeeze_excitation(x, w1, b1, w2, b2, *, data_format="NCHW",
                       block_bytes_target=None, vmem_block_budget=None,
                       vmem_limit_cap=None, force_chunked=False, hw_chunk=None,
                       min_grid_steps=4):
    """SqueezeExcitation forward.

    x : (N, C, H, W) for "NCHW", or (N, H, W, C) for "NHWC".
    w1: (SE, C) reduce 1x1-conv weight, b1: (SE,)
    w2: (C, SE) expand 1x1-conv weight, b2: (C,)
    """
    if data_format == "NCHW":
        N, C, H, W = x.shape
        channels_last = False
        x3 = x.reshape(N, C, H * W)   # lane dim = H*W (lane-dense when %128==0)
    elif data_format == "NHWC":
        N, H, W, C = x.shape
        channels_last = True
        # Lane dim = C: lane-dense only when C % 128 == 0.  For small/ragged C
        # this costs masked stores and a lane-padded VMEM footprint (accounted
        # for below); prefer NCHW (or C % 128 == 0) feature maps.  We keep the
        # layout zero-copy rather than paying a transpose HBM round trip.
        x3 = x.reshape(N, H * W, C)
    else:
        raise ValueError(f"unsupported data_format: {data_format}")
    HW = H * W
    SE = w1.shape[0]
    assert w1.shape == (SE, C) and w2.shape == (C, SE)
    assert b1.shape == (SE,) and b2.shape == (C,)

    cap_default, budget_default, target_default = _tpu_memory_config()
    if vmem_limit_cap is None:
        vmem_limit_cap = cap_default
    if vmem_block_budget is None:
        vmem_block_budget = min(budget_default, vmem_limit_cap - (2 << 20))
    if block_bytes_target is None:
        block_bytes_target = target_default
    min_grid_steps = max(1, int(min_grid_steps))

    # Tiny parameters; gate math stays in f32 regardless of the x dtype.
    w1f = w1.astype(jnp.float32)
    w2f = w2.astype(jnp.float32)
    b1r = b1.reshape(1, SE).astype(jnp.float32)
    b2r = b2.reshape(1, C).astype(jnp.float32)
    use_mxu = (C >= 128 and SE >= 16)

    io_dtype = x.dtype
    sample_shape = (1,) + x3.shape[1:]
    # Per-sample per-step VMEM cost: x + out blocks double-buffered in the I/O
    # dtype, plus f32 compute temporaries — all in padded (sublane,lane) tiles.
    sample_cost = (4 * _padded_block_bytes(sample_shape, io_dtype)
                   + 2 * _padded_block_bytes(sample_shape, jnp.float32))
    slab_bytes = C * HW * jnp.dtype(io_dtype).itemsize   # logical HBM bytes

    fused_fits = sample_cost <= vmem_block_budget

    if fused_fits and not force_chunked:
        # ---------------- fused single-pass path ----------------
        nb_cap = max(1, vmem_block_budget // sample_cost)
        nb_tgt = max(1, block_bytes_target // max(1, slab_bytes))
        # Keep >= min_grid_steps grid steps so both v7x TensorCores get work
        # (the extra ~0.35us/step elsewhere is negligible).
        Nb = int(max(1, min(N, nb_cap, nb_tgt, pl.cdiv(N, min_grid_steps))))
        vmem_limit = int(min(vmem_limit_cap,
                             max(16 << 20, Nb * sample_cost + (8 << 20))))

        kernel = functools.partial(_se_fused_kernel,
                                   channels_last=channels_last, use_mxu=use_mxu)
        x_block = (Nb, x3.shape[1], x3.shape[2])
        out3 = pl.pallas_call(
            kernel,
            out_shape=jax.ShapeDtypeStruct(x3.shape, x3.dtype),
            grid_spec=pltpu.PrefetchScalarGridSpec(
                num_scalar_prefetch=0,
                grid=(pl.cdiv(N, Nb),),
                in_specs=[
                    pl.BlockSpec(x_block, lambda i: (i, 0, 0)),
                    pl.BlockSpec(w1f.shape, lambda i: (0, 0)),
                    pl.BlockSpec(b1r.shape, lambda i: (0, 0)),
                    pl.BlockSpec(w2f.shape, lambda i: (0, 0)),
                    pl.BlockSpec(b2r.shape, lambda i: (0, 0)),
                ],
                out_specs=pl.BlockSpec(x_block, lambda i: (i, 0, 0)),
            ),
            compiler_params=pltpu.CompilerParams(
                dimension_semantics=("parallel",),
                vmem_limit_bytes=vmem_limit,
            ),
        )(x3, w1f, b1r, w2f, b2r)
        return out3.reshape(x.shape)

    # -------- chunked three-step fallback (huge per-sample slabs) --------
    def _chunk_block(c):
        return (1, c, C) if channels_last else (1, C, c)

    def _chunk_cost(c):
        bs = _chunk_block(c)
        return (4 * _padded_block_bytes(bs, io_dtype)
                + 2 * _padded_block_bytes(bs, jnp.float32))

    if hw_chunk is None:
        k = max(1, int(vmem_block_budget // max(1, _chunk_cost(128))))
        hw_chunk = k * 128
        if hw_chunk < HW and HW % hw_chunk != 0:
            # Prefer a chunk that divides HW so the masked-tail branch is
            # never emitted (pure VALU filler otherwise).
            for kk in range(k, 0, -1):
                if HW % (kk * 128) == 0:
                    hw_chunk = kk * 128
                    break
    hw_chunk = int(hw_chunk)
    if hw_chunk >= HW:
        hw_chunk = HW                       # full spatial extent: always legal
    else:
        hw_chunk = max(128, _round_up(hw_chunk, 128))   # keep lanes aligned
        if hw_chunk >= HW:
            hw_chunk = HW
    num_hw = int(pl.cdiv(HW, hw_chunk))
    hw_rem = HW % hw_chunk

    if channels_last:
        x_block = (1, hw_chunk, C)
        x_imap = lambda i, j: (i, j, 0)
    else:
        x_block = (1, C, hw_chunk)
        x_imap = lambda i, j: (i, 0, j)

    block_cost = _chunk_cost(hw_chunk)
    vmem_limit = int(min(vmem_limit_cap,
                         max(16 << 20, block_cost + (8 << 20))))

    # Pass 1a: fully parallel per-chunk partial sums -> (N, num_hw, 1, C) f32.
    psum = pl.pallas_call(
        functools.partial(_se_partial_sum_kernel,
                          channels_last=channels_last, hw_rem=hw_rem),
        out_shape=jax.ShapeDtypeStruct((N, num_hw, 1, C), jnp.float32),
        grid_spec=pltpu.PrefetchScalarGridSpec(
            num_scalar_prefetch=0,
            grid=(N, num_hw),
            in_specs=[pl.BlockSpec(x_block, x_imap)],
            out_specs=pl.BlockSpec((1, 1, 1, C), lambda i, j: (i, j, 0, 0)),
        ),
        compiler_params=pltpu.CompilerParams(
            dimension_semantics=("parallel", "parallel"),
            vmem_limit_bytes=vmem_limit,
        ),
    )(x3)

    # Pass 1b: tiny gate step over the pooled sums -> (N, 1, C) f32 gate.
    gate_step_cost = (2 * _padded_block_bytes((N, num_hw, 1, C), jnp.float32)
                      + 2 * _padded_block_bytes((N, 1, C), jnp.float32))
    gate_vmem_limit = int(min(vmem_limit_cap,
                              max(16 << 20, gate_step_cost + (4 << 20))))
    gate = pl.pallas_call(
        functools.partial(_se_gate_kernel, use_mxu=use_mxu, inv_hw=1.0 / HW),
        out_shape=jax.ShapeDtypeStruct((N, 1, C), jnp.float32),
        grid_spec=pltpu.PrefetchScalarGridSpec(
            num_scalar_prefetch=0,
            grid=(1,),
            in_specs=[
                pl.BlockSpec((N, num_hw, 1, C), lambda i: (0, 0, 0, 0)),
                pl.BlockSpec(w1f.shape, lambda i: (0, 0)),
                pl.BlockSpec(b1r.shape, lambda i: (0, 0)),
                pl.BlockSpec(w2f.shape, lambda i: (0, 0)),
                pl.BlockSpec(b2r.shape, lambda i: (0, 0)),
            ],
            out_specs=pl.BlockSpec((N, 1, C), lambda i: (0, 0, 0)),
        ),
        compiler_params=pltpu.CompilerParams(
            dimension_semantics=("arbitrary",),
            vmem_limit_bytes=gate_vmem_limit,
        ),
    )(psum, w1f, b1r, w2f, b2r)

    # Pass 2: fully parallel elementwise scale (f32 multiply, cast on store).
    out3 = pl.pallas_call(
        functools.partial(_se_scale_kernel, channels_last=channels_last),
        out_shape=jax.ShapeDtypeStruct(x3.shape, x3.dtype),
        grid_spec=pltpu.PrefetchScalarGridSpec(
            num_scalar_prefetch=0,
            grid=(N, num_hw),
            in_specs=[
                pl.BlockSpec(x_block, x_imap),
                # Lane-dense (width C) gate block, constant across the hw axis,
                # so it stays resident and is fetched once per batch row.
                pl.BlockSpec((1, 1, C), lambda i, j: (i, 0, 0)),
            ],
            out_specs=pl.BlockSpec(x_block, x_imap),
        ),
        compiler_params=pltpu.CompilerParams(
            dimension_semantics=("parallel", "parallel"),
            vmem_limit_bytes=vmem_limit,
        ),
    )(x3, gate)
    return out3.reshape(x.shape)


# ---------------------------------------------------------------------------
# Pure-JAX reference (NCHW)
# ---------------------------------------------------------------------------
def _reference(x, w1, b1, w2, b2):
    pooled = jnp.mean(x, axis=(-2, -1), keepdims=True)                 # (N,C,1,1)
    s = jnp.einsum("oc,nchw->nohw", w1, pooled) + b1[None, :, None, None]
    s = s * jax.nn.sigmoid(s)                                          # Swish
    e = jnp.einsum("os,nshw->nohw", w2, s) + b2[None, :, None, None]
    return jax.nn.sigmoid(e) * x


if __name__ == "__main__":
    # Small SE block: inplanes=8, se_planes=2 (reduction ratio r=4).
    N, C, H, W = 2, 8, 16, 16
    SE = 2

    key = jax.random.PRNGKey(0)
    kx, k1, k2, k3, k4 = jax.random.split(key, 5)
    x = jax.random.normal(kx, (N, C, H, W), dtype=jnp.float32)
    # Conv2d(inplanes, se_planes, 1): weight (SE, C, 1, 1) -> (SE, C), bias (SE,)
    w1 = jax.random.normal(k1, (SE, C), dtype=jnp.float32) * 0.1
    b1 = jax.random.normal(k2, (SE,), dtype=jnp.float32) * 0.1
    # Conv2d(se_planes, inplanes, 1): weight (C, SE, 1, 1) -> (C, SE), bias (C,)
    w2 = jax.random.normal(k3, (C, SE), dtype=jnp.float32) * 0.1
    b2 = jax.random.normal(k4, (C,), dtype=jnp.float32) * 0.1

    ref = _reference(x, w1, b1, w2, b2)

    # 1) fused single-pass path (NCHW, f32), HW on the lane axis
    out = jax.block_until_ready(squeeze_excitation(x, w1, b1, w2, b2))
    assert out.shape == (N, C, H, W)
    assert jnp.max(jnp.abs(out - ref)) < 1e-5

    # 2) fused path with a channels-last (NHWC) feature map
    x_nhwc = jnp.transpose(x, (0, 2, 3, 1))
    out_nhwc = jax.block_until_ready(
        squeeze_excitation(x_nhwc, w1, b1, w2, b2, data_format="NHWC"))
    assert jnp.max(jnp.abs(jnp.transpose(out_nhwc, (0, 3, 1, 2)) - ref)) < 1e-5

    # 3) chunked three-step fallback (forced; auto-selected when the padded
    #    (C,HW) slab exceeds the per-step VMEM budget, e.g. big maps on v7x)
    out_chunk = jax.block_until_ready(
        squeeze_excitation(x, w1, b1, w2, b2, force_chunked=True, hw_chunk=128))
    assert jnp.max(jnp.abs(out_chunk - ref)) < 1e-5

    out_chunk_nhwc = jax.block_until_ready(
        squeeze_excitation(x_nhwc, w1, b1, w2, b2, data_format="NHWC",
                           force_chunked=True, hw_chunk=128))
    assert jnp.max(jnp.abs(jnp.transpose(out_chunk_nhwc, (0, 3, 1, 2)) - ref)) < 1e-5

    # 4) bf16 streaming I/O (pool, gate and the final multiply all in f32;
    #    only the HBM bytes are bf16)
    out_bf16 = jax.block_until_ready(
        squeeze_excitation(x.astype(jnp.bfloat16), w1, b1, w2, b2))
    assert out_bf16.dtype == jnp.bfloat16
    assert jnp.max(jnp.abs(out_bf16.astype(jnp.float32) - ref)) < 5e-2

    print("KERNEL_OK")
</pallas_src>

<mosaic_0001>
module attributes {stable_mosaic.version = 11 : i64} {
  func.func @_se_fused_kernel(%arg0: i32, %arg1: memref<1x8x256xf32, #tpu.memory_space<vmem>>, %arg2: memref<2x8xf32, #tpu.memory_space<vmem>>, %arg3: memref<1x2xf32, #tpu.memory_space<vmem>>, %arg4: memref<8x2xf32, #tpu.memory_space<vmem>>, %arg5: memref<1x8xf32, #tpu.memory_space<vmem>>, %arg6: memref<1x8x256xf32, #tpu.memory_space<vmem>>) attributes {dimension_semantics = [#tpu.dimension_semantics<parallel>], iteration_bounds = array<i64: 2>, scalar_prefetch = 0 : i64, scratch_operands = 0 : i64, tpu.core_type = #tpu.core_type<tc>, window_params = [{transform_indices = @transform_0, window_bounds = array<i64: 1, 8, 256>}, {pipeline_mode = #tpu.pipeline_mode<synchronous>, transform_indices = @transform_1, window_bounds = array<i64: 2, 8>}, {pipeline_mode = #tpu.pipeline_mode<synchronous>, transform_indices = @transform_2, window_bounds = array<i64: 1, 2>}, {pipeline_mode = #tpu.pipeline_mode<synchronous>, transform_indices = @transform_3, window_bounds = array<i64: 8, 2>}, {pipeline_mode = #tpu.pipeline_mode<synchronous>, transform_indices = @transform_4, window_bounds = array<i64: 1, 8>}, {transform_indices = @transform_5, window_bounds = array<i64: 1, 8, 256>}]} {
    %c0 = arith.constant 0 : index
    %c0_0 = arith.constant 0 : index
    %c0_1 = arith.constant 0 : index
    %0 = vector.load %arg1[%c0, %c0_0, %c0_1] : memref<1x8x256xf32, #tpu.memory_space<vmem>>, vector<1x8x256xf32>
    %cst = arith.constant dense<0.000000e+00> : vector<1x8xf32>
    %1 = vector.multi_reduction <add>, %0, %cst [2] : vector<1x8x256xf32> to vector<1x8xf32>
    %cst_2 = arith.constant 3.906250e-03 : f32
    %2 = vector.broadcast %cst_2 : f32 to vector<1x8xf32>
    %3 = arith.mulf %1, %2 : vector<1x8xf32>
    %c0_3 = arith.constant 0 : index
    %c0_4 = arith.constant 0 : index
    %4 = vector.load %arg2[%c0_3, %c0_4] : memref<2x8xf32, #tpu.memory_space<vmem>>, vector<2x8xf32>
    %c0_5 = arith.constant 0 : index
    %c0_6 = arith.constant 0 : index
    %5 = vector.load %arg3[%c0_5, %c0_6] : memref<1x2xf32, #tpu.memory_space<vmem>>, vector<1x2xf32>
    %c0_7 = arith.constant 0 : index
    %c0_8 = arith.constant 0 : index
    %6 = vector.load %arg4[%c0_7, %c0_8] : memref<8x2xf32, #tpu.memory_space<vmem>>, vector<8x2xf32>
    %c0_9 = arith.constant 0 : index
    %c0_10 = arith.constant 0 : index
    %7 = vector.load %arg5[%c0_9, %c0_10] : memref<1x8xf32, #tpu.memory_space<vmem>>, vector<1x8xf32>
    %8 = vector.shape_cast %3 : vector<1x8xf32> to vector<1x1x8xf32>
    %9 = vector.shape_cast %4 : vector<2x8xf32> to vector<1x2x8xf32>
    %10 = vector.broadcast %8 : vector<1x1x8xf32> to vector<1x2x8xf32>
    %11 = arith.mulf %10, %9 : vector<1x2x8xf32>
    %cst_11 = arith.constant dense<0.000000e+00> : vector<1x2xf32>
    %12 = vector.multi_reduction <add>, %11, %cst_11 [2] : vector<1x2x8xf32> to vector<1x2xf32>
    %13 = arith.addf %12, %5 : vector<1x2xf32>
    %14 = arith.negf %13 : vector<1x2xf32>
    %15 = math.exp %14 : vector<1x2xf32>
    %cst_12 = arith.constant 1.000000e+00 : f32
    %16 = vector.broadcast %cst_12 : f32 to vector<1x2xf32>
    %17 = arith.addf %16, %15 : vector<1x2xf32>
    %18 = arith.divf %16, %17 : vector<1x2xf32>
    %19 = arith.mulf %13, %18 : vector<1x2xf32>
    %20 = vector.shape_cast %19 : vector<1x2xf32> to vector<1x1x2xf32>
    %21 = vector.shape_cast %6 : vector<8x2xf32> to vector<1x8x2xf32>
    %22 = vector.broadcast %20 : vector<1x1x2xf32> to vector<1x8x2xf32>
    %23 = arith.mulf %22, %21 : vector<1x8x2xf32>
    %cst_13 = arith.constant dense<0.000000e+00> : vector<1x8xf32>
    %24 = vector.multi_reduction <add>, %23, %cst_13 [2] : vector<1x8x2xf32> to vector<1x8xf32>
    %25 = arith.addf %24, %7 : vector<1x8xf32>
    %26 = arith.negf %25 : vector<1x8xf32>
    %27 = math.exp %26 : vector<1x8xf32>
    %cst_14 = arith.constant 1.000000e+00 : f32
    %28 = vector.broadcast %cst_14 : f32 to vector<1x8xf32>
    %29 = arith.addf %28, %27 : vector<1x8xf32>
    %30 = arith.divf %28, %29 : vector<1x8xf32>
    %c0_15 = arith.constant 0 : index
    %c0_16 = arith.constant 0 : index
    %c0_17 = arith.constant 0 : index
    %31 = vector.load %arg1[%c0_15, %c0_16, %c0_17] : memref<1x8x256xf32, #tpu.memory_space<vmem>>, vector<1x8x256xf32>
    %32 = vector.shape_cast %30 : vector<1x8xf32> to vector<1x8x1xf32>
    %33 = vector.broadcast %32 : vector<1x8x1xf32> to vector<1x8x256xf32>
    %34 = arith.mulf %31, %33 : vector<1x8x256xf32>
    %c0_18 = arith.constant 0 : index
    %c0_19 = arith.constant 0 : index
    %c0_20 = arith.constant 0 : index
    %35 = vector.load %arg6[%c0_18, %c0_19, %c0_20] : memref<1x8x256xf32, #tpu.memory_space<vmem>>, vector<1x8x256xf32>
    tpu.vector_store %arg6[%c0_18, %c0_19, %c0_20], %34 {strides = array<i32>} : memref<1x8x256xf32, #tpu.memory_space<vmem>>, vector<1x8x256xf32>,
    return
  }
  func.func @transform_0(%arg0: i32) -> (i32, i32, i32) {
    %c0_i32 = arith.constant 0 : i32
    %c0_i32_0 = arith.constant 0 : i32
    %c0_i32_1 = arith.constant 0 : i32
    return %arg0, %c0_i32, %c0_i32_0 : i32, i32, i32
  }
  func.func @transform_1(%arg0: i32) -> (i32, i32) {
    %c0_i32 = arith.constant 0 : i32
    %c0_i32_0 = arith.constant 0 : i32
    %c0_i32_1 = arith.constant 0 : i32
    return %c0_i32, %c0_i32_0 : i32, i32
  }
  func.func @transform_2(%arg0: i32) -> (i32, i32) {
    %c0_i32 = arith.constant 0 : i32
    %c0_i32_0 = arith.constant 0 : i32
    %c0_i32_1 = arith.constant 0 : i32
    return %c0_i32, %c0_i32_0 : i32, i32
  }
  func.func @transform_3(%arg0: i32) -> (i32, i32) {
    %c0_i32 = arith.constant 0 : i32
    %c0_i32_0 = arith.constant 0 : i32
    %c0_i32_1 = arith.constant 0 : i32
    return %c0_i32, %c0_i32_0 : i32, i32
  }
  func.func @transform_4(%arg0: i32) -> (i32, i32) {
    %c0_i32 = arith.constant 0 : i32
    %c0_i32_0 = arith.constant 0 : i32
    %c0_i32_1 = arith.constant 0 : i32
    return %c0_i32, %c0_i32_0 : i32, i32
  }
  func.func @transform_5(%arg0: i32) -> (i32, i32, i32) {
    %c0_i32 = arith.constant 0 : i32
    %c0_i32_0 = arith.constant 0 : i32
    %c0_i32_1 = arith.constant 0 : i32
    return %arg0, %c0_i32, %c0_i32_0 : i32, i32, i32
  }
}

</mosaic_0001>

<bundles_post_ra>
// kernel: tpu_custom_call.1
= control target key start
LH: loop header
LB: loop body
LE: loop exit
PB: predicated region body
PF: predicated region fallthrough
CT: control target
= control target key end

     0   :  { %10 = vsyncpa [#allocation3], 0  ;;  %s966_s0 = inlined_call_operand.hbm [shape: f32[2,8,256], index: 0, kind: input, shape index: {}]   ;;  %s967_s1 = inlined_call_operand.vmem [shape: f32[2,8], index: 1, kind: input, shape index: {}]   ;;  %s968_s2 = inlined_call_operand.vmem [shape: f32[1,2], index: 2, kind: input, shape index: {}]   ;;  %s969_s3 = inlined_call_operand.vmem [shape: f32[8,2], index: 3, kind: input, shape index: {}]   ;;  %s970_s4 = inlined_call_operand.vmem [shape: f32[1,8], index: 4, kind: input, shape index: {}]   ;;  %s971_s5 = inlined_call_operand.hbm [shape: f32[2,8,256], index: 5, kind: output, shape index: {}]  }
   0x1   :  { %12 = vsyncpa [#allocation3 + $0x1], 0 }
   0x2   :  { %13 = vsyncpa [#allocation4], 0 }
   0x3   :  { %15 = vsyncpa [#allocation4 + $0x1], 0  ;;  %s781_s18 = smov 0   ;;  %s783_s19 = smov 0  }
   0x4   :  { %s785_s20 = smov 0   ;;  %s787_s21 = smov 0  }
   0x5 LB: > { %s802_s22 = sadd.s32 4294967295, %s746_s21   ;;  %s577_s23 = sadd.s32 4294967294, %s746_s21   ;;  %s746_s21 = sphi %s787_s21, %s988_s21   ;;  %s742_s20 = sphi %s785_s20, %s987_s20   ;;  %s738_s19 = sphi %s783_s19, %s986_s19   ;;  %s734_s18 = sphi %s781_s18, %s985_s18  }
   0x6   : > { %s806_s24 = sadd.s32 1, %s746_s21   ;;  %s28_s25 = sadd.s32 1, %s742_s20 }
   0x7   : > { %s25_s26 = ssub.s32 %s746_s21, %s806_s24  ;;  %p35_p0 = scmp.ne.s32.totalorder %s742_s20, %s738_s19 }
   0x8   : > { %p26_p1 = scmp.eq.s32.totalorder %s25_s26, 0  ;;  %p36_p2 = scmp.eq.s32.totalorder %s746_s21, 0 }
   0x9   : > { %p41_p3 = scmp.ne.s32.totalorder %s738_s19, %s734_s18  ;;  %p42_p4 = scmp.eq.s32.totalorder %s802_s22, 0 }
   0xa   : > { %s818_s27 = scalar_select %p26_p1, %s742_s20, %s28_s25  }
   0xb   : > { %p820_p5 = por %p36_p2, %p35_p0  ;;  %p824_p6 = por %p42_p4, %p41_p3 }
   0xc   : > { %p149_p7 = scmp.eq.s32.totalorder %s802_s22, 1  ;;  %p155_p8 = scmp.eq.s32.totalorder %s577_s23, 1 }
   0xd   : > { %s975_s29 = scalar_select %p824_p6, 1, 0 }
   0xe   : > { %p609_p10 = scmp.lt.s32.totalorder %s746_s21, 2  ;;  %p831_p11 = por %p149_p7, %p35_p0 }
   0xf   : > { %p835_p12 = por %p155_p8, %p41_p3  ;;  %s187_s7 = sand.u32 1, %s742_s20  }
  0x10   : > { %s976_s30 = scalar_select %p831_p11, 1, 0 }
  0x11   : > { %s977_s6 = scalar_select %p835_p12, 1, 0 }
  0x12   : > { %s595_s8 = sshll.u32 %s746_s21, 8  ;;  %s580_s9 = sshll.u32 %s187_s7, 4 }
  0x13   : > { %s844_s12 = scalar_lea.hbm %s966_s0, %s595_s8  ;;  %s191_s13 = scalar_lea.vmem [#allocation2], %s580_s9 }
  0x14   : > { %s199_s14 = sshll.u32 %s191_s13, 4  ;;  %p848_p13 = pnand %p609_p10, %p820_p5  ;;  %s852_s14 = int_to_ptr.vmem [resolvable:$true] %s199_s14 }
  0x15   : > { %s188_s16 = scalar_lea.sflag [#allocation3], %s187_s7  ;;  %s654_s17 = scalar_lea.hbm %s844_s12, 256 }
  0x16   : > { %p655_p2 = scmp.ne.s32.totalorder %s844_s12, %s654_s17  ;;  %p656_p3 = pneg %p848_p13 }
  0x17   : > { %s659_s26 = scalar_lea.hbm %s966_s0, 512  ;;  %p660_p5 = scmp.lt.s32.totalorder %s844_s12, %s966_s0 }
  0x18   : > { %p657_p4 = pnand %p656_p3, %p655_p2  ;;  %p661_p8 = scmp.lt.s32.totalorder %s659_s26, %s654_s17 }
  0x1a   : > { %p658_p7 = pneg %p657_p4  ;;  %p662_p10 = por %p661_p8, %p660_p5 }
  0x1c   : > { %p663_p9 = pnand %p662_p10, %p658_p7 }
  0x1e   : > { %666 = shalt.err (!%p663_p9)
}
  0x1f   : > { %s667_s7 = scalar_lea.vmem %s852_s14, 256  ;;  %s748_s9 = smov [#allocation2]  }
  0x20   : > { %p668_p0 = scmp.ne.s32.totalorder %s852_s14, %s667_s7  ;;  %s672_s10 = sshll.u32 %s748_s9, 4  ;;  %s673_s10 = int_to_ptr.vmem [resolvable:$false] %s672_s10 }
  0x21   : > { %s674_s11 = scalar_lea.vmem %s673_s10, 512  ;;  %p675_p4 = scmp.lt.s32.totalorder %s852_s14, %s673_s10 }
  0x22   : > { %p670_p1 = pnand %p668_p0, %p656_p3  ;;  %p676_p12 = scmp.lt.s32.totalorder %s674_s11, %s667_s7 }
  0x24   : > { %p671_p2 = pneg %p670_p1  ;;  %p677_p11 = por %p676_p12, %p675_p4 }
  0x26   : > { %p678_p6 = pnand %p677_p11, %p671_p2 }
  0x28   : > { %681 = shalt.err (!%p678_p6)
}
  0x29   : > { %604 = dma.hbm_to_vmem [thread:$0]  (!%p848_p13), %s844_s12, 256, %s852_s14, %s188_s16  }
  0x2a   : > { %p979_p9 = scmp.lt.s32.totalorder %s746_s21, 3  ;;  %p980_p7 = scmp.ge.s32.totalorder %s746_s21, 1 }
  0x2c   : > { %p205_p0 = pnand %p980_p7, %p979_p9 }
  0x2d   : > { %s879_s13 = sand.u32 (!%p205_p0), 1, %s738_s19   ;;  %p981_p6 = scmp.ne.s32.totalorder (!%p205_p0), %s975_s29, 0 }
  0x2e   : > { %208 = sbr.rel (%p205_p0) target bundleno = 959 (0x3bf), region = 40  ;;  %s584_s17 = sshll.u32 (!%p205_p0), %s879_s13, 4 }
  0x2f   : > { %s211_s23 = scalar_lea.sflag (!%p205_p0), [#allocation3], %s879_s13  ;;  %s214_s15 = scalar_lea.vmem (!%p205_p0), [#allocation2], %s584_s17 }
  0x33   : > { %725 = dma.done.wait (%p981_p6), %s211_s23, 256  }
  0x34   : > { %727 = vsyncadd (%p981_p6), %s211_s23, 4294967040  ;;  %v252_v0 = vlaneseq  ;;  %v889_v3 = vld [vmem:[%s214_s15] sm:$0xff]  ;;  %v891_v4 = vld [vmem:[%s214_s15 + $0x8] sm:$0xff]  ;;  %v749_v9 = vmov 0   ;;  %vm288_vm0 = vcmask 1041409   ;;  %vm291_vm1 = vcmask 58368  }
  0x35   : > { %v247_v5 = vld [vmem:[%s967_s1] sm:$0x3]  ;;  %v243_v6 = vadd.f32 %v891_v4, %v889_v3  ;;  %644 = vset.pattern.permute.xlu1 %v749_v9  ;;  %645 = vset.pattern.permute.xlu0 %v749_v9  ;;  %vm450_vm2 = vcmask 1042434   ;;  %vm452_vm3 = vcmask 1043459   ;;  %vm454_vm4 = vcmask 1044484   ;;  %s596_s7 = sshll.u32 %s802_s22, 8 }
  0x36   : > { %v253_v1 = vshrl.u32 %v252_v0, 7  ;;  %v586_v17 = vld [vmem:[%s968_s2] ss:$0 sm:$0xff]  ;;  %v279_v31 = vand.u32 127, %v252_v0  ;;  %vm456_vm5 = vcmask 1045509   ;;  %vm458_vm6 = vcmask 1046534   ;;  %s929_s15 = scalar_lea.hbm %s971_s5, %s596_s7 }
  0x37   : > { %244 = vadd.xlane.f32.xlu0 %v243_v6  ;;  %v249_v18 = vld [vmem:[%s969_s3] sm:$0xff]  ;;  %vm460_vm7 = vcmask 1047559   ;;  %vm463_vm8 = vcmask 15360   ;;  %s240_s9 = scalar_lea.vmem [#allocation5], %s584_s17  ;;  %s493_s12 = scalar_lea.sflag [#allocation4], %s879_s13 }
  0x38   : > { %v261_v2 = vsub.s32 1, %v253_v1  ;;  %v254_v8 = vsub.s32 0, %v253_v1  ;;  %v329_v21 = vsub.s32 2, %v253_v1  ;;  %v336_v23 = vsub.s32 3, %v253_v1  ;;  %s507_s10 = sshll.u32 %s240_s9, 4  ;;  %p982_p12 = scmp.ne.s32.totalorder %s976_s30, 0  ;;  %s508_s10 = int_to_ptr.vmem [resolvable:$true] %s507_s10 }
  0x39   : > { %v343_v25 = vsub.s32 4, %v253_v1  ;;  %v357_v27 = vsub.s32 6, %v253_v1  ;;  %v364_v29 = vsub.s32 7, %v253_v1  ;;  %v904_v33 = vsub.s32 %v279_v31, %v253_v1  ;;  %s682_s14 = scalar_lea.vmem %s508_s10, 256  ;;  %s750_s22 = smov [#allocation5]  }
  0x3a   : > { %v262_v7 = vrot.slane %v247_v5, %v261_v2  ;;  %v255_v10 = vrot.slane %v247_v5, %v254_v8  ;;  %v316_v19 = vrot.slane %v249_v18, %v254_v8  ;;  %v323_v20 = vrot.slane %v249_v18, %v261_v2  ;;  %p683_p11 = scmp.ne.s32.totalorder %s508_s10, %s682_s14  ;;  %s686_s17 = sshll.u32 %s750_s22, 4  ;;  %s687_s17 = int_to_ptr.vmem [resolvable:$false] %s686_s17 }
  0x3b   : > { %v330_v22 = vrot.slane %v249_v18, %v329_v21  ;;  %v337_v24 = vrot.slane %v249_v18, %v336_v23  ;;  %v344_v26 = vrot.slane %v249_v18, %v343_v25  ;;  %v358_v28 = vrot.slane %v249_v18, %v357_v27  ;;  %s688_s29 = scalar_lea.vmem %s687_s17, 512  ;;  %p689_p3 = scmp.lt.s32.totalorder %s508_s10, %s687_s17 }
  0x3c   : > { %264 = vbcast.lane.b32.xlu1 %v262_v7, 256  ;;  %v365_v30 = vrot.slane %v249_v18, %v364_v29  ;;  %v350_v39 = vsub.s32 5, %v253_v1  ;;  %v588_v1 = vld [vmem:[%s970_s4] ss:$0 sm:$0xff]  ;;  %p684_p13 = pnand %p683_p11, %p982_p12  ;;  %p690_p5 = scmp.lt.s32.totalorder %s688_s29, %s682_s14 }
  0x3e   : > { %v351_v40 = vrot.slane %v249_v18, %v350_v39  ;;  %p685_p1 = pneg %p684_p13  ;;  %p691_p8 = por %p690_p5, %p689_p3 }
  0x40   : > { %p692_p10 = pnand %p691_p8, %p685_p1 }
  0x4d   : > { %257 = vbcast.lane.b32.xlu0 %v255_v10, 256 }
  0x51   : > { %301 = vbcast.lane.b32.xlu0 %v586_v17, 256 }
  0x55   : > { %318 = vbcast.lane.b32.xlu0 %v316_v19, 256 }
  0x59   : > { %325 = vbcast.lane.b32.xlu0 %v323_v20, 256 }
  0x5d   : > { %332 = vbcast.lane.b32.xlu0 %v330_v22, 256 }
  0x61   : > { %339 = vbcast.lane.b32.xlu0 %v337_v24, 256 }
  0x65   : > { %346 = vbcast.lane.b32.xlu0 %v344_v26, 256 }
  0x69   : > { %360 = vbcast.lane.b32.xlu0 %v358_v28, 256 }
  0x6d   : > { %367 = vbcast.lane.b32.xlu0 %v365_v30, 256 }
  0xae   : > { %v265_v15 = vpop.permute.xlu1 %264 }
  0xc0   : > { %v245_v11 = vpop.xlane.xlu0 %244 }
  0xc1   : > { %v246_v12 = vmul.f32 0.00390625, %v245_v11 }
  0xc3   : > { %v269_v16 = vmul.f32 %v265_v15, %v246_v12 }
  0xc4   : > { %v258_v13 = vpop.permute.xlu0 %257 }
  0xc5   : > { %v268_v14 = vmul.f32 %v258_v13, %v246_v12 }
  0xc7   : > { %273 = vperm.xlu1 %644, %v268_v14  }
  0xc8   : > { %v302_v41 = vpop.permute.xlu0 %301 }
  0xcb   : > { %276 = vperm.xlu1 %644, %v269_v16  }
  0xcc   : > { %v319_v45 = vpop.permute.xlu0 %318 }
  0xd0   : > { %v326_v46 = vpop.permute.xlu0 %325 }
  0xd4   : > { %v333_v49 = vpop.permute.xlu0 %332 }
  0xd8   : > { %v340_v50 = vpop.permute.xlu0 %339 }
  0xdc   : > { %v347_v52 = vpop.permute.xlu0 %346 }
  0xe0   : > { %v361_v56 = vpop.permute.xlu0 %360 }
  0xe4   : > { %v368_v62 = vpop.permute.xlu0 %367 }
 0x142   : > { %v274_v32 = vpop.permute.xlu1 %273 }
 0x143   : > { %v283_v35 = vrot.slane %v274_v32, %v904_v33 }
 0x146   : > { %v277_v34 = vpop.permute.xlu1 %276 }
 0x147   : > { %v287_v36 = vrot.slane %v277_v34, %v904_v33 }
 0x149   : > { %v289_v37 = vsel %vm288_vm0, %v287_v36, %v283_v35 }
 0x14a   : > { %v292_v38 = vsel %vm291_vm1, %v289_v37, 0.0 }
 0x14b   : > { %293 = vadd.xlane.f32.xlu1 %v292_v38 }
 0x15c   : > { %353 = vbcast.lane.b32.xlu1 %v351_v40, 256 }
 0x1d4   : > { %v294_v42 = vpop.xlane.xlu1 %293 }
 0x1d5   : > { %v304_v43 = vadd.f32 %v302_v41, %v294_v42 }
 0x1d7   : > { %v587_v44 = vmul.f32 -1.442695, %v304_v43 }
 0x1d8   : > { %v354_v59 = vpop.permute.xlu1 %353 }
 0x1d9   : > { %646 = vpow2.f32 %v587_v44 }
 0x1e6   : > { %v647_v47 = vpop.eup %646 }
 0x1e7   : > { %v308_v48 = vadd.f32 1.0, %v647_v47 }
 0x1e9   : > { %648 = vrcp.f32 %v308_v48 }
 0x1f6   : > { %v649_v51 = vpop.eup %648 }
 0x1f7   : > { %v311_v53 = vmul.f32 %v649_v51, %v304_v43 }
 0x1f9   : > { %v377_v54 = vmul.f32 %v319_v45, %v311_v53  ;;  %v378_v55 = vmul.f32 %v326_v46, %v311_v53  ;;  %v379_v57 = vmul.f32 %v333_v49, %v311_v53  ;;  %v380_v58 = vmul.f32 %v340_v50, %v311_v53 }
 0x1fa   : > { %v381_v60 = vmul.f32 %v347_v52, %v311_v53  ;;  %v382_v61 = vmul.f32 %v354_v59, %v311_v53  ;;  %v383_v63 = vmul.f32 %v361_v56, %v311_v53  ;;  %v384_v0 = vmul.f32 %v368_v62, %v311_v53 }
 0x1fb   : > { %394 = vperm.xlu0 %645, %v377_v54   ;;  %397 = vperm.xlu1 %644, %v378_v55  }
 0x1ff   : > { %400 = vperm.xlu0 %645, %v379_v57   ;;  %403 = vperm.xlu1 %644, %v380_v58  }
 0x203   : > { %409 = vperm.xlu1 %644, %v382_v61   ;;  %406 = vperm.xlu0 %645, %v381_v60  }
 0x207   : > { %412 = vperm.xlu0 %645, %v383_v63   ;;  %415 = vperm.xlu1 %644, %v384_v0  }
 0x20b   : > { %473 = vbcast.lane.b32.xlu1 %v588_v1, 256 }
 0x276   : > { %v398_v2 = vpop.permute.xlu1 %397  ;;  %v395_v5 = vpop.permute.xlu0 %394 }
 0x277   : > { %v424_v6 = vrot.slane %v398_v2, %v904_v33  ;;  %v420_v7 = vrot.slane %v395_v5, %v904_v33 }
 0x279   : > { %v449_v11 = vsel %vm288_vm0, %v424_v6, %v420_v7 }
 0x27a   : > { %v404_v8 = vpop.permute.xlu1 %403  ;;  %v401_v9 = vpop.permute.xlu0 %400 }
 0x27b   : > { %v428_v10 = vrot.slane %v401_v9, %v904_v33  ;;  %v432_v12 = vrot.slane %v404_v8, %v904_v33 }
 0x27d   : > { %v451_v13 = vsel %vm450_vm2, %v428_v10, %v449_v11 }
 0x27e   : > { %v410_v14 = vpop.permute.xlu1 %409  ;;  %v407_v15 = vpop.permute.xlu0 %406  ;;  %v453_v18 = vsel %vm452_vm3, %v432_v12, %v451_v13 }
 0x27f   : > { %v436_v16 = vrot.slane %v407_v15, %v904_v33  ;;  %v440_v17 = vrot.slane %v410_v14, %v904_v33 }
 0x281   : > { %v455_v19 = vsel %vm454_vm4, %v436_v16, %v453_v18 }
 0x282   : > { %v416_v20 = vpop.permute.xlu1 %415  ;;  %v413_v21 = vpop.permute.xlu0 %412  ;;  %v457_v24 = vsel %vm456_vm5, %v440_v17, %v455_v19 }
 0x283   : > { %v448_v22 = vrot.slane %v416_v20, %v904_v33  ;;  %v444_v23 = vrot.slane %v413_v21, %v904_v33 }
 0x285   : > { %v459_v25 = vsel %vm458_vm6, %v444_v23, %v457_v24 }
 0x286   : > { %v461_v26 = vsel %vm460_vm7, %v448_v22, %v459_v25  ;;  %v474_v28 = vpop.permute.xlu1 %473 }
 0x287   : > { %v464_v27 = vsel %vm463_vm8, %v461_v26, 0.0 }
 0x288   : > { %465 = vadd.xlane.f32.xlu0 %v464_v27 }
 0x311   : > { %v466_v29 = vpop.xlane.xlu0 %465 }
 0x312   : > { %v476_v30 = vadd.f32 %v474_v28, %v466_v29 }
 0x314   : > { %v589_v31 = vmul.f32 -1.442695, %v476_v30 }
 0x316   : > { %650 = vpow2.f32 %v589_v31 }
 0x323   : > { %v651_v32 = vpop.eup %650 }
 0x324   : > { %v480_v34 = vadd.f32 1.0, %v651_v32 }
 0x326   : > { %652 = vrcp.f32 %v480_v34 }
 0x333   : > { %v653_v33 = vpop.eup %652 }
 0x334   : > { %485 = vperm.xlu1 %644, %v653_v33  }
 0x3af   : > { %v486_v35 = vpop.permute.xlu1 %485 }
 0x3b0   : > { %v488_v36 = vmul.f32 %v486_v35, %v889_v3  ;;  %v489_v37 = vmul.f32 %v486_v35, %v891_v4 }
 0x3b2   : > { %490 = vst [vmem:[%s240_s9] sm:$0xff] %v488_v36  ;;  %491 = vst [vmem:[%s240_s9 + $0x8] sm:$0xff] %v489_v37 }
 0x3b3   : > { %695 = shalt.err (!%p692_p10)
}
 0x3b4   : > { %s696_s16 = scalar_lea.hbm %s929_s15, 256  ;;  %s700_s26 = scalar_lea.hbm %s971_s5, 512 }
 0x3b5   : > { %p697_p2 = scmp.ne.s32.totalorder %s929_s15, %s696_s16  ;;  %p701_p7 = scmp.lt.s32.totalorder %s929_s15, %s971_s5 }
 0x3b6   : > { %p702_p0 = scmp.lt.s32.totalorder %s700_s26, %s696_s16 }
 0x3b7   : > { %p698_p4 = pnand %p697_p2, %p982_p12 }
 0x3b8   : > { %p703_p6 = por %p702_p0, %p701_p7 }
 0x3b9   : > { %p699_p9 = pneg %p698_p4 }
 0x3bb   : > { %p704_p11 = pnand %p703_p6, %p699_p9 }
 0x3bd   : > { %707 = shalt.err (!%p704_p11)
}
 0x3be   : > { %599 = dma.vmem_to_hbm [thread:$0]  (%p982_p12), %s508_s10, 256, %s929_s15, %s493_s12  }
 0x3bf PF: > { %s519_s7 = sand.u32 1, %s734_s18   ;;  %p983_p13 = scmp.ne.s32.totalorder %s977_s6, 0 }
 0x3c0   : > { %p984_p1 = scmp.ge.s32.totalorder %s746_s21, 2  ;;  %s520_s9 = scalar_lea.sflag [#allocation4], %s519_s7 }
 0x3c2   : > { %p606_p3 = pnand %p984_p1, %p983_p13 }
 0x3c4   : > { %p607_p5 = pneg %p606_p3 }
 0x3c6   : > { %729 = dma.done.wait (%p607_p5), %s520_s9, 256  }
 0x3c7   : > { %731 = vsyncadd (%p607_p5), %s520_s9, 4294967040  ;;  %p18_p8 = scmp.ge.s32.totalorder %s806_s24, 4   ;;  %s985_s18 = smov %s738_s19 }
 0x3c8   : > { %s986_s19 = smov %s742_s20  ;;  %s987_s20 = smov %s818_s27 }
 0x3c9   : > { %s988_s21 = smov %s806_s24  ;;  %20 = sbr.rel (!%p18_p8) target bundleno = 5 (0x5), region = 85 }
 0x3ce   :  { %525 = vsyncpa [#allocation3], 1 }
 0x3cf   :  { %527 = vsyncpa [#allocation3 + $0x1], 1 }
 0x3d0   :  { %528 = vsyncpa [#allocation4], 1 }
 0x3d1   :  { %530 = vsyncpa [#allocation4 + $0x1], 1 }

</bundles_post_ra>
